<compile_context>
chip_gen: v5e
topology: v5e:2x2
jax: 0.10.0
libtpu: 0.0.40
codegen_flags: <defaults>
</compile_context>

<pallas_src>
import functools

import jax
import jax.numpy as jnp
from jax.experimental import pallas as pl
from jax.experimental.pallas import tpu as pltpu


def _ceil_to(a, m):
    return -(-a // m) * m


# ---------------------------------------------------------------------------
# Kernels
# ---------------------------------------------------------------------------
def _atten_drop_single_kernel(x_ref, o_ref, *, inv_c, drop_threshold):
    """Whole channel extent in one block: no scratch, no pl.when.

    x_ref: (bt, C, HW) native dtype; o_ref: (bt, 1, HW) float32.
    """
    attn = jnp.sum(x_ref[...], axis=1, keepdims=True,
                   dtype=jnp.float32) * inv_c              # (bt, 1, HW)
    max_val = jnp.max(attn, axis=2, keepdims=True)         # (bt, 1, 1)
    o_ref[...] = (attn > max_val * drop_threshold).astype(o_ref.dtype)


def _accumulate_channel_sum(acc_ref, x, c_idx, *, tc, c_total, mask_channels):
    """Add channel-partial sums of x (1, tc, HW) into acc_ref (1, 8, HW).

    Keeps 8 parallel partial sums (one per sublane) so the accumulator
    read-modify-write is vreg-dense every grid step; the single XLU
    cross-sublane collapse happens in the caller's finalize branch.
    Ragged last channel tiles are masked (OOB block rows are NOT zero).
    """
    if mask_channels:
        ch = c_idx * tc + jax.lax.broadcasted_iota(jnp.int32, x.shape, 1)
        x = jnp.where(ch < c_total, x, jnp.zeros_like(x))
    n_ch = x.shape[1]
    if n_ch % 8 == 0:
        partial = x[:, 0:8, :].astype(jnp.float32)
        for g in range(1, n_ch // 8):
            partial = partial + x[:, g * 8:(g + 1) * 8, :].astype(jnp.float32)
        acc_ref[...] += partial
    else:
        # Only reachable when the tile is the full, non-8-aligned channel
        # extent (tiny C with huge HW): plain masked reduce into sublane 0.
        acc_ref[:, 0:1, :] = acc_ref[:, 0:1, :] + jnp.sum(
            x, axis=1, keepdims=True, dtype=jnp.float32)


def _atten_drop_tiled_kernel(x_ref, o_ref, acc_ref, *, inv_c, drop_threshold,
                             tc, c_total, mask_channels):
    """Channel axis tiled on an 'arbitrary' grid axis. grid = (B, n_c)."""
    c = pl.program_id(1)

    @pl.when(c == 0)
    def _():
        acc_ref[...] = jnp.zeros_like(acc_ref)

    _accumulate_channel_sum(acc_ref, x_ref[...], c, tc=tc, c_total=c_total,
                            mask_channels=mask_channels)

    @pl.when(c == pl.num_programs(1) - 1)
    def _():
        attn = jnp.sum(acc_ref[...], axis=1, keepdims=True) * inv_c  # (1,1,HW)
        max_val = jnp.max(attn, axis=2, keepdims=True)               # (1,1,1)
        o_ref[...] = (attn > max_val * drop_threshold).astype(o_ref.dtype)


def _channel_mean_kernel(x_ref, o_ref, acc_ref, *, inv_c, tc, c_total,
                         mask_channels):
    """Pass 1 of the large-HW fallback: channel mean. grid = (B, n_hw, n_c)."""
    c = pl.program_id(2)

    @pl.when(c == 0)
    def _():
        acc_ref[...] = jnp.zeros_like(acc_ref)

    _accumulate_channel_sum(acc_ref, x_ref[...], c, tc=tc, c_total=c_total,
                            mask_channels=mask_channels)

    @pl.when(c == pl.num_programs(2) - 1)
    def _():
        o_ref[...] = jnp.sum(acc_ref[...], axis=1, keepdims=True) * inv_c


# ---------------------------------------------------------------------------
# Tiling plan
# ---------------------------------------------------------------------------
def _vmem_budget(requested_target):
    try:
        cap = int(pltpu.get_tpu_info().vmem_capacity_bytes)
    except Exception:                      # info query best-effort
        cap = 64 * 1024 * 1024             # conservative (v7x-sized VMEM)
    if requested_target is None:
        # ~12 MiB per input buffer (24 MiB double-buffered): amortizes the
        # ~0.35us/step grid overhead at v7x's 3.2 TB/s HBM while staying well
        # inside 64 MiB physical VMEM; also fine on v5e/v6e (128 MiB) since we
        # raise vmem_limit_bytes explicitly.
        target = max(1 << 20, min(12 << 20, cap // 5))
    else:
        target = int(requested_target)
    return cap, target


def _plan(B, C, HW, itemsize, target_bytes):
    mult = max(8, 32 // max(1, itemsize))  # dtype-native sublane packing
    row_bytes = HW * itemsize
    per_batch = C * row_bytes
    if min(C, mult) * row_bytes > target_bytes:
        # Even a minimal channel slab blows the budget -> chunk HW (two-pass).
        lanes = _ceil_to(HW, 128)
        thw = min(lanes,
                  max(128, (target_bytes // (mult * itemsize * 128)) * 128))
        tc = max(mult, (target_bytes // (thw * itemsize)) // mult * mult)
        tc = min(tc, C)
        return {"kind": "two_pass", "thw": thw, "tc": tc}
    if per_batch <= target_bytes:
        # Whole C fits in one block -> fold batch elements to amortize
        # per-step overhead for small feature maps (bt must divide B).
        max_bt = max(1, target_bytes // per_batch)
        bt = max(d for d in range(1, B + 1) if B % d == 0 and d <= max_bt)
        return {"kind": "single", "bt": bt}
    tc = max(mult, min((target_bytes // row_bytes) // mult * mult, C))
    if tc >= C:
        return {"kind": "single", "bt": 1}
    return {"kind": "multi", "tc": tc}


# ---------------------------------------------------------------------------
# Wrapper
# ---------------------------------------------------------------------------
def atten_drop(x, drop_threshold=0.3, *, _target_bytes=None):
    """x: (B, C, H, W) -> (B, 1, H, W) float32 drop mask (AttenDrop.forward)."""
    if not 0.0 <= float(drop_threshold) <= 1.0:
        raise ValueError("Drop threshold must be in range [0, 1].")
    B, C, H, W = x.shape
    HW = H * W
    itemsize = jnp.dtype(x.dtype).itemsize
    vmem_cap, target_bytes = _vmem_budget(_target_bytes)
    plan = _plan(B, C, HW, itemsize, target_bytes)

    x_flat = x.reshape(B, C, HW)           # no padding: HW stays full-extent
    inv_c = 1.0 / C
    thr = float(drop_threshold)
    lanes = _ceil_to(HW, 128)
    cost = pl.CostEstimate(
        flops=2 * B * C * HW,
        transcendentals=0,
        bytes_accessed=B * C * HW * itemsize + B * HW * 4,
    )

    def _limit(need_bytes):
        # Explicit scoped-VMEM limit: generous vs. actual buffer need, capped
        # below physical VMEM (64 MiB on v7x, 128 MiB on v5e/v6e).
        return int(min(vmem_cap * 3 // 4,
                       max(32 << 20, need_bytes + (8 << 20))))

    if plan["kind"] == "single":
        bt = plan["bt"]
        need = (2 * bt * _ceil_to(C, 8) * lanes * itemsize
                + 2 * bt * 8 * lanes * 4)
        out_flat = pl.pallas_call(
            functools.partial(_atten_drop_single_kernel, inv_c=inv_c,
                              drop_threshold=thr),
            out_shape=jax.ShapeDtypeStruct((B, 1, HW), jnp.float32),
            grid_spec=pltpu.PrefetchScalarGridSpec(
                num_scalar_prefetch=0,
                grid=(B // bt,),
                in_specs=[pl.BlockSpec((bt, C, HW), lambda b: (b, 0, 0))],
                out_specs=pl.BlockSpec((bt, 1, HW), lambda b: (b, 0, 0)),
            ),
            compiler_params=pltpu.CompilerParams(
                dimension_semantics=("parallel",),
                vmem_limit_bytes=_limit(need)),
            cost_estimate=cost,
        )(x_flat)
        return out_flat.reshape(B, 1, H, W)

    if plan["kind"] == "multi":
        tc = plan["tc"]
        n_c = pl.cdiv(C, tc)
        mask_channels = (C % tc) != 0
        need = 2 * tc * lanes * itemsize + 2 * 8 * lanes * 4 + 8 * lanes * 4
        out_flat = pl.pallas_call(
            functools.partial(_atten_drop_tiled_kernel, inv_c=inv_c,
                              drop_threshold=thr, tc=tc, c_total=C,
                              mask_channels=mask_channels),
            out_shape=jax.ShapeDtypeStruct((B, 1, HW), jnp.float32),
            grid_spec=pltpu.PrefetchScalarGridSpec(
                num_scalar_prefetch=0,
                grid=(B, n_c),
                in_specs=[pl.BlockSpec((1, tc, HW), lambda b, c: (b, c, 0))],
                out_specs=pl.BlockSpec((1, 1, HW), lambda b, c: (b, 0, 0)),
                scratch_shapes=[pltpu.VMEM((1, 8, HW), jnp.float32)],
            ),
            compiler_params=pltpu.CompilerParams(
                dimension_semantics=("parallel", "arbitrary"),
                vmem_limit_bytes=_limit(need)),
            cost_estimate=cost,
        )(x_flat)
        return out_flat.reshape(B, 1, H, W)

    # Two-pass fallback for very large H*W: pass 1 (Pallas) computes the
    # channel mean with HW chunked on a 'parallel' grid axis (splits across
    # both TensorCores on v7x); pass 2 (plain JAX over B*HW*4 bytes) does the
    # global per-batch max + threshold — negligible traffic next to x.
    thw, tc = plan["thw"], plan["tc"]
    n_hw = pl.cdiv(HW, thw)
    n_c = pl.cdiv(C, tc)
    mask_channels = (C % tc) != 0
    need = 2 * _ceil_to(tc, 8) * thw * itemsize + 2 * 8 * thw * 4 + 8 * thw * 4
    attn = pl.pallas_call(
        functools.partial(_channel_mean_kernel, inv_c=inv_c, tc=tc,
                          c_total=C, mask_channels=mask_channels),
        out_shape=jax.ShapeDtypeStruct((B, 1, HW), jnp.float32),
        grid_spec=pltpu.PrefetchScalarGridSpec(
            num_scalar_prefetch=0,
            grid=(B, n_hw, n_c),
            in_specs=[pl.BlockSpec((1, tc, thw), lambda b, h, c: (b, c, h))],
            out_specs=pl.BlockSpec((1, 1, thw), lambda b, h, c: (b, 0, h)),
            scratch_shapes=[pltpu.VMEM((1, 8, thw), jnp.float32)],
        ),
        compiler_params=pltpu.CompilerParams(
            dimension_semantics=("parallel", "parallel", "arbitrary"),
            vmem_limit_bytes=_limit(need)),
        cost_estimate=cost,
    )(x_flat)
    max_val = jnp.max(attn, axis=2, keepdims=True)          # (B, 1, 1)
    mask = (attn > max_val * thr).astype(jnp.float32)
    return mask.reshape(B, 1, H, W)


# ---------------------------------------------------------------------------
# Reference + tests
# ---------------------------------------------------------------------------
def atten_drop_ref(x, drop_threshold=0.3):
    """Pure-JAX reference mirroring the PyTorch forward."""
    attn = jnp.mean(x.astype(jnp.float32), axis=1, keepdims=True)
    max_val = jnp.max(attn, axis=(1, 2, 3), keepdims=True)
    return (attn > max_val * drop_threshold).astype(jnp.float32)


def _check(name, out, x, thr):
    ref = atten_drop_ref(x, thr)
    assert out.shape == ref.shape, f"{name}: shape {out.shape} vs {ref.shape}"
    attn = jnp.mean(x.astype(jnp.float32), axis=1, keepdims=True)
    max_val = jnp.max(attn, axis=(1, 2, 3), keepdims=True)
    # Ignore points numerically on the threshold (summation-order ulp effects).
    safe = jnp.abs(attn - max_val * thr) > 1e-5 * jnp.maximum(
        jnp.abs(max_val), 1e-6)
    ok = bool(jnp.all(jnp.where(safe, out == ref, True)))
    assert ok, f"{name}: Pallas output mismatch vs reference"


if __name__ == "__main__":
    key = jax.random.PRNGKey(0)
    k1, k2, k3 = jax.random.split(key, 3)
    thr = 0.3

    # 1) Small map, whole C in one block, batch-folding path (bt = B).
    x1 = jax.random.normal(k1, (2, 4, 16, 16), dtype=jnp.float32)
    out1 = jax.block_until_ready(atten_drop(x1, thr))
    _check("single-tile", out1, x1, thr)

    # 2) Non-128 H*W (14x14, no padding) + forced channel tiling (tc=16 over
    #    C=20): exercises the 8-sublane accumulator and ragged-channel mask.
    x2 = jax.random.normal(k2, (2, 20, 14, 14), dtype=jnp.float32)
    out2 = jax.block_until_ready(atten_drop(x2, thr, _target_bytes=14 * 1024))
    _check("channel-tiled", out2, x2, thr)

    # 3) Forced large-HW two-pass fallback (HW chunked on a 'parallel' axis,
    #    ragged HW chunk + ragged channel tile).
    x3 = jax.random.normal(k3, (1, 20, 30, 30), dtype=jnp.float32)
    out3 = jax.block_until_ready(atten_drop(x3, thr, _target_bytes=16 * 1024))
    _check("two-pass", out3, x3, thr)

    print("KERNEL_OK")
</pallas_src>

<mosaic_0001>
module attributes {stable_mosaic.version = 11 : i64} {
  func.func @_atten_drop_single_kernel(%arg0: i32, %arg1: memref<2x4x256xf32, #tpu.memory_space<vmem>>, %arg2: memref<2x1x256xf32, #tpu.memory_space<vmem>>) attributes {dimension_semantics = [#tpu.dimension_semantics<parallel>], iteration_bounds = array<i64: 1>, scalar_prefetch = 0 : i64, scratch_operands = 0 : i64, tpu.core_type = #tpu.core_type<tc>, window_params = [{transform_indices = @transform_0, window_bounds = array<i64: 2, 4, 256>}, {transform_indices = @transform_1, window_bounds = array<i64: 2, 1, 256>}]} {
    %c0 = arith.constant 0 : index
    %c0_0 = arith.constant 0 : index
    %c0_1 = arith.constant 0 : index
    %0 = vector.load %arg1[%c0, %c0_0, %c0_1] : memref<2x4x256xf32, #tpu.memory_space<vmem>>, vector<2x4x256xf32>
    %cst = arith.constant dense<0.000000e+00> : vector<2x256xf32>
    %1 = vector.multi_reduction <add>, %0, %cst [1] : vector<2x4x256xf32> to vector<2x256xf32>
    %2 = vector.shape_cast %1 : vector<2x256xf32> to vector<2x1x256xf32>
    %cst_2 = arith.constant 2.500000e-01 : f32
    %3 = vector.broadcast %cst_2 : f32 to vector<2x1x256xf32>
    %4 = arith.mulf %2, %3 : vector<2x1x256xf32>
    %cst_3 = arith.constant dense<0xFF800000> : vector<2x1xf32>
    %5 = vector.multi_reduction <maximumf>, %4, %cst_3 [2] : vector<2x1x256xf32> to vector<2x1xf32>
    %6 = vector.shape_cast %5 : vector<2x1xf32> to vector<2x1x1xf32>
    %cst_4 = arith.constant 3.000000e-01 : f32
    %7 = vector.broadcast %cst_4 : f32 to vector<2x1x1xf32>
    %8 = arith.mulf %6, %7 : vector<2x1x1xf32>
    %9 = vector.broadcast %8 : vector<2x1x1xf32> to vector<2x1x256xf32>
    %10 = arith.cmpf ogt, %4, %9 : vector<2x1x256xf32>
    %11 = arith.extui %10 : vector<2x1x256xi1> to vector<2x1x256xi32>
    %12 = arith.sitofp %11 : vector<2x1x256xi32> to vector<2x1x256xf32>
    %c0_5 = arith.constant 0 : index
    %c0_6 = arith.constant 0 : index
    %c0_7 = arith.constant 0 : index
    %13 = vector.load %arg2[%c0_5, %c0_6, %c0_7] : memref<2x1x256xf32, #tpu.memory_space<vmem>>, vector<2x1x256xf32>
    tpu.vector_store %arg2[%c0_5, %c0_6, %c0_7], %12 {strides = array<i32>} : memref<2x1x256xf32, #tpu.memory_space<vmem>>, vector<2x1x256xf32>,
    return
  }
  func.func @transform_0(%arg0: i32) -> (i32, i32, i32) {
    %c0_i32 = arith.constant 0 : i32
    %c0_i32_0 = arith.constant 0 : i32
    %c0_i32_1 = arith.constant 0 : i32
    return %arg0, %c0_i32, %c0_i32_0 : i32, i32, i32
  }
  func.func @transform_1(%arg0: i32) -> (i32, i32, i32) {
    %c0_i32 = arith.constant 0 : i32
    %c0_i32_0 = arith.constant 0 : i32
    %c0_i32_1 = arith.constant 0 : i32
    return %arg0, %c0_i32, %c0_i32_0 : i32, i32, i32
  }
}

</mosaic_0001>

<bundles_post_ra>
// kernel: tpu_custom_call.1
= control target key start
LH: loop header
LB: loop body
LE: loop exit
PB: predicated region body
PF: predicated region fallthrough
CT: control target
= control target key end

     0   :  { %6 = vsyncpa [#allocation3], 0  ;;  %s225_s0 = inlined_call_operand.hbm [shape: f32[2,4,256], index: 0, kind: input, shape index: {}]   ;;  %s226_s1 = inlined_call_operand.hbm [shape: f32[2,1,256], index: 1, kind: output, shape index: {}]  }
   0x1   :  { %7 = vsyncpa [#allocation4], 0  ;;  %s12_s8 = sshll.u32 %s225_s0, 4  ;;  %s192_s9 = smov [#allocation2]   ;;  %s13_s8 = int_to_ptr.hbm [resolvable:$true] %s12_s8 }
   0x2   :  { %s14_s10 = sshll.u32 %s192_s9, 4  ;;  %s193_s11 = smov 128   ;;  %s15_s10 = int_to_ptr.vmem [resolvable:$true] %s14_s10 }
   0x3   :  { %s194_s12 = smov 8  }
   0x4   :  { %20 = dma.hbm_to_vmem [thread:$0]  %s13_s8, 256, %s15_s10, [#allocation3], %s193_s11, %s193_s11, %s194_s12  }
   0x5   :  { %188 = dma.done.wait [#allocation3], 256  }
   0x6   :  { %189 = vsyncadd [#allocation3], 4294967040  ;;  %v25_v0 = vld [vmem:[#allocation2] sm:$0xff]  ;;  %v26_v1 = vld [vmem:[#allocation2 + $0x8] sm:$0xff]  ;;  %vm40_vm0 = vcmask 1043456   ;;  %v104_v41 = vlaneseq  ;;  %vm99_vm3 = vcmask 1040384  }
   0x7   :  { %29 = vst [vmem:[#allocation1] ss:$2 sm:$0xff] %v25_v0  ;;  %v195_v43 = vmov 0.0   ;;  %s196_s0 = smov [#allocation5]   ;;  %s116_s16 = sshll.u32 %s226_s1, 4  ;;  %s117_s16 = int_to_ptr.hbm [resolvable:$true] %s116_s16 }
   0x8   :  { %33 = vst [vmem:[#allocation1 + $0x10] ss:$2 sm:$0xff] %v26_v1  ;;  %vm212_vm4 = vcmp.lt.s32.totalorder %v104_v41, 256  ;;  %s114_s13 = sshll.u32 %s196_s0, 4  ;;  %s197_s17 = smov 32   ;;  %s115_s13 = int_to_ptr.vmem [resolvable:$true] %s114_s13 }
   0x9   :  { %s198_s18 = smov 2  }
   0xe   :  { %v30_v2 = vld.sshfl [vmem:[#allocation1] sm:$0xff pattern:$0x75316420]  ;;  %v31_v3 = vld.sshfl [vmem:[#allocation1 + $0x8] sm:$0xff pattern:$0x75316420] }
   0xf   :  { %v41_v4 = vsel %vm40_vm0, %v30_v2, 0.0  ;;  %v48_v5 = vsel %vm40_vm0, %v31_v3, 0.0  ;;  %v34_v6 = vld.sshfl [vmem:[#allocation1 + $0x10] sm:$0xff pattern:$0x75316420] }
  0x10   :  { %v42_v7 = vrot.slane %v41_v4, 4  ;;  %v49_v8 = vrot.slane %v48_v5, 4  ;;  %v35_v9 = vld.sshfl [vmem:[#allocation1 + $0x18] sm:$0xff pattern:$0x75316420]  ;;  %v55_v10 = vsel %vm40_vm0, %v34_v6, 0.0 }
  0x11   :  { %v56_v11 = vrot.slane %v55_v10, 4  ;;  %v62_v12 = vsel %vm40_vm0, %v35_v9, 0.0 }
  0x12   :  { %v43_v13 = vadd.f32 %v42_v7, %v41_v4  ;;  %v50_v14 = vadd.f32 %v49_v8, %v48_v5  ;;  %v63_v15 = vrot.slane %v62_v12, 4 }
  0x13   :  { %v57_v16 = vadd.f32 %v56_v11, %v55_v10 }
  0x14   :  { %v44_v17 = vrot.slane %v43_v13, 2  ;;  %v51_v18 = vrot.slane %v50_v14, 2  ;;  %v64_v19 = vadd.f32 %v63_v15, %v62_v12 }
  0x15   :  { %v58_v20 = vrot.slane %v57_v16, 2 }
  0x16   :  { %v45_v21 = vadd.f32 %v44_v17, %v43_v13  ;;  %v52_v22 = vadd.f32 %v51_v18, %v50_v14  ;;  %v65_v23 = vrot.slane %v64_v19, 2 }
  0x17   :  { %v59_v24 = vadd.f32 %v58_v20, %v57_v16 }
  0x18   :  { %v46_v25 = vrot.slane %v45_v21, 1  ;;  %v53_v26 = vrot.slane %v52_v22, 1  ;;  %v66_v27 = vadd.f32 %v65_v23, %v64_v19 }
  0x19   :  { %v60_v28 = vrot.slane %v59_v24, 1 }
  0x1a   :  { %v47_v29 = vadd.f32 %v46_v25, %v45_v21  ;;  %v54_v30 = vadd.f32 %v53_v26, %v52_v22  ;;  %v67_v31 = vrot.slane %v66_v27, 1 }
  0x1b   :  { %v61_v34 = vadd.f32 %v60_v28, %v59_v24 }
  0x1c   :  { %v69_v32 = vmul.f32 0.25, %v47_v29  ;;  %v70_v33 = vmul.f32 0.25, %v54_v30  ;;  %v68_v35 = vadd.f32 %v67_v31, %v66_v27 }
  0x1d   :  { %v71_v37 = vmul.f32 0.25, %v61_v34 }
  0x1e   :  { %v73_v36 = vmax.f32 %v69_v32, %v70_v33  ;;  %v72_v38 = vmul.f32 0.25, %v68_v35 }
  0x20   :  { %74 = vmax.xlane.f32.xlu0 %v73_v36  ;;  %v76_v39 = vmax.f32 %v71_v37, %v72_v38 }
  0x28   :  { %77 = vmax.xlane.f32.xlu0 %v76_v39 }
  0x93   :  { %v75_v40 = vpop.xlane.xlu0 %74 }
  0x94   :  { %v79_v42 = vmul.f32 0.3, %v75_v40 }
  0x96   :  { %vm81_vm1 = vcmp.gt.f32.partialorder %v69_v32, %v79_v42  ;;  %vm82_vm2 = vcmp.gt.f32.partialorder %v70_v33, %v79_v42 }
  0x97   :  { %v130_v44 = vsel %vm82_vm2, 1.0, %v195_v43  ;;  %v129_v47 = vsel %vm81_vm1, 1.0, %v195_v43 }
  0x98   :  { %v97_v46 = vrot.slane %v130_v44, 7 }
  0x9a   :  { %v100_v48 = vsel %vm99_vm3, %v129_v47, %v97_v46 }
  0x9b   :  { %108 = vst.msk [vmem:[#allocation5] sm:$0x3] %vm212_vm4, %v100_v48  ;;  %v78_v49 = vpop.xlane.xlu0 %77 }
  0x9c   :  { %v80_v50 = vmul.f32 0.3, %v78_v49 }
  0x9e   :  { %vm83_vm5 = vcmp.gt.f32.partialorder %v71_v37, %v80_v50  ;;  %vm84_vm6 = vcmp.gt.f32.partialorder %v72_v38, %v80_v50 }
  0x9f   :  { %v132_v51 = vsel %vm84_vm6, 1.0, %v195_v43  ;;  %v131_v53 = vsel %vm83_vm5, 1.0, %v195_v43 }
  0xa0   :  { %v98_v52 = vrot.slane %v132_v51, 7 }
  0xa2   :  { %v101_v54 = vsel %vm99_vm3, %v131_v53, %v98_v52 }
  0xa3   :  { %109 = vst.msk [vmem:[#allocation5 + $0x2] sm:$0x3] %vm212_vm4, %v101_v54 }
  0xa4   :  { %122 = dma.vmem_to_hbm [thread:$0]  %s115_s13, 64, %s117_s16, [#allocation4], %s197_s17, %s197_s17, %s198_s18  }
  0xa5   :  { %190 = dma.done.wait [#allocation4], 64  }
  0xa6   :  { %191 = vsyncadd [#allocation4], 4294967232 }
  0xa7   :  { %127 = vsyncpa [#allocation3], 1 }
  0xa8   :  { %128 = vsyncpa [#allocation4], 1 }

</bundles_post_ra>
